<compile_context>
chip_gen: v7x
topology: tpu7x:2x2x1
jax: 0.10.0
libtpu: 0.0.40
codegen_flags: <defaults>
</compile_context>

<pallas_src>
import jax
import jax.numpy as jnp
import numpy as np
from jax.experimental import pallas as pl
from jax.experimental.pallas import tpu as pltpu


def michel_enhancer_kernel(x_ref, src_row_ref, src_col_ref, dst_row_ref,
                           w1_ref, w2_ref, vec_ref, w_ref, o_ref):
    N, F = x_ref.shape
    E = src_row_ref.shape[1]
    H = w1_ref.shape[1]

    x = x_ref[...]                                                   # [N, F]

    # --- connectivity masks, built in-register (never touch HBM) ---
    row_ne = jax.lax.broadcasted_iota(jnp.int32, (N, E), 0)          # node id per row
    St = (row_ne == src_row_ref[...]).astype(jnp.float32)            # [N,E] src one-hot
    Dt = (row_ne == dst_row_ref[...]).astype(jnp.float32)            # [N,E] dst one-hot
    col_en = jax.lax.broadcasted_iota(jnp.int32, (E, N), 1)          # node id per col
    Se = (col_en == src_col_ref[...]).astype(jnp.float32)            # [E,N] src one-hot

    # --- endpoint score from out-degree ---
    deg = jnp.sum(St, axis=1, keepdims=True)                         # [N,1]
    score = jnp.clip(1.0 / (deg + 1.0), 0.0, 1.0)                    # [N,1], in (0,1]

    # gather score[src[e]] on the MXU in column orientation (no transpose):
    v = jnp.dot(Se, score, preferred_element_type=jnp.float32)       # [E,1]

    # --- segment softmax over dst, max-free (v <= 1 so exp(v) <= e) ---
    ex = jnp.exp(v)                                                  # [E,1]
    sel = jax.lax.broadcasted_iota(jnp.int32, (E, 2), 1)
    G = ex * jnp.where(sel == 0, 1.0, v)                             # [E,2] = [ex, ex*v]
    S = jnp.dot(Dt, G, preferred_element_type=jnp.float32)           # [N,2] = [den, num]
    prop = S[:, 1:2] / (S[:, 0:1] + 1e-16)                           # [N,1]

    # feature_weights softmax + alpha=0.2 already folded in the wrapper.
    factor = w_ref[0] * score + w_ref[1] * prop                      # [N,1]

    # --- endpoint_net MLP (independent of the graph chain; pipelines alongside) ---
    b1 = vec_ref[0:1, 0:H]                                           # [1,H]
    b2 = vec_ref[1:2, :]                                             # [1,F]
    gamma = vec_ref[2:3, :]                                          # [1,F]
    beta = vec_ref[3:4, :]                                           # [1,F]
    h = jnp.dot(x, w1_ref[...], preferred_element_type=jnp.float32) + b1
    h = jnp.maximum(h, 0.0)
    net = jnp.dot(h, w2_ref[...], preferred_element_type=jnp.float32) + b2

    # --- residual (alpha folded into factor) + LayerNorm (eps = 1e-5) ---
    y = x + factor * net
    mu = jnp.mean(y, axis=1, keepdims=True)
    var = jnp.mean((y - mu) ** 2, axis=1, keepdims=True)
    o_ref[...] = (y - mu) * jax.lax.rsqrt(var + 1e-5) * gamma + beta


def michel_enhancer(x, src, dst, params):
    """x: [N, F] hit features; src/dst: [E] int32 edge endpoints."""
    N, F = x.shape
    E = src.shape[0]
    W1, b1, W2, b2, gamma, beta, fw = params
    H = W1.shape[1]

    # Hoist the tiny 2-way softmax out of the kernel and fold the residual
    # scale alpha = 0.2 into the two weights (travel via SMEM).
    sw = jax.nn.softmax(fw.astype(jnp.float32))
    wvec = (0.2 * sw).astype(jnp.float32)                            # [2]

    # Pack the small per-feature vectors into one slab (1 DMA instead of 4).
    vecs = jnp.zeros((4, F), jnp.float32)
    vecs = vecs.at[0, :H].set(b1)
    vecs = vecs.at[1, :].set(b2)
    vecs = vecs.at[2, :].set(gamma)
    vecs = vecs.at[3, :].set(beta)

    # src in both orientations so no in-kernel transpose is ever needed.
    src_row = src.reshape(1, E).astype(jnp.int32)
    src_col = src.reshape(E, 1).astype(jnp.int32)
    dst_row = dst.reshape(1, E).astype(jnp.int32)

    vmem = pl.BlockSpec(memory_space=pltpu.MemorySpace.VMEM)
    smem = pl.BlockSpec(memory_space=pltpu.MemorySpace.SMEM)
    return pl.pallas_call(
        michel_enhancer_kernel,
        out_shape=jax.ShapeDtypeStruct((N, F), jnp.float32),
        in_specs=[vmem, vmem, vmem, vmem, vmem, vmem, vmem, smem],
        out_specs=vmem,
    )(x, src_row, src_col, dst_row, W1, W2, vecs, wvec)


def reference(x, src, dst, params):
    """Pure-JAX reference mirroring the PyTorch forward."""
    W1, b1, W2, b2, gamma, beta, fw = params
    N, _ = x.shape
    deg = jax.ops.segment_sum(jnp.ones_like(src, jnp.float32), src, N)
    score = jnp.clip(1.0 / (deg + 1.0), 0.0, 1.0)
    v = score[src]
    gmax = jax.ops.segment_max(v, dst, N)
    ex = jnp.exp(v - gmax[dst])
    denom = jax.ops.segment_sum(ex, dst, N)
    ew = ex / (denom[dst] + 1e-16)
    prop = jax.ops.segment_sum(ew * v, dst, N)
    w = jax.nn.softmax(fw)
    factor = w[0] * score + w[1] * prop
    h = jnp.maximum(x @ W1 + b1, 0.0)
    enhanced = (h @ W2 + b2) * factor[:, None]
    y = x + 0.2 * enhanced
    mu = y.mean(-1, keepdims=True)
    var = ((y - mu) ** 2).mean(-1, keepdims=True)
    return (y - mu) / jnp.sqrt(var + 1e-5) * gamma + beta


if __name__ == "__main__":
    N, E, F = 32, 128, 32           # hits, delaunay edges, hit features
    H = F // 2

    key = jax.random.PRNGKey(0)
    kx, ks, kd, k1, k2 = jax.random.split(key, 5)

    x = jax.random.normal(kx, (N, F), jnp.float32)
    src = jax.random.randint(ks, (E,), 0, N, jnp.int32)
    dst = jax.random.randint(kd, (E,), 0, N, jnp.int32)

    # Deterministic synthetic parameters (shapes from the module __init__).
    W1 = jax.random.normal(k1, (F, H), jnp.float32) * 0.1           # endpoint_net[0]
    b1 = 0.01 * jnp.arange(H, dtype=jnp.float32)
    b2 = 0.01 * jnp.arange(F, dtype=jnp.float32)
    W2 = jax.random.normal(k2, (H, F), jnp.float32) * 0.1           # endpoint_net[2]
    gamma = jnp.ones((F,), jnp.float32)                             # feature_norm.weight
    beta = jnp.zeros((F,), jnp.float32)                             # feature_norm.bias
    fw = jnp.ones((2,), jnp.float32)                                # feature_weights
    params = (W1, b1, W2, b2, gamma, beta, fw)

    out = michel_enhancer(x, src, dst, params)
    jax.block_until_ready(out)

    ref = reference(x, src, dst, params)
    np.testing.assert_allclose(np.asarray(out), np.asarray(ref), rtol=2e-4, atol=2e-4)
    print("KERNEL_OK")
</pallas_src>

<mosaic_0001>
module attributes {stable_mosaic.version = 11 : i64} {
  func.func @michel_enhancer_kernel(%arg0: memref<32x32xf32, #tpu.memory_space<vmem>>, %arg1: memref<1x128xi32, #tpu.memory_space<vmem>>, %arg2: memref<128x1xi32, #tpu.memory_space<vmem>>, %arg3: memref<1x128xi32, #tpu.memory_space<vmem>>, %arg4: memref<32x16xf32, #tpu.memory_space<vmem>>, %arg5: memref<16x32xf32, #tpu.memory_space<vmem>>, %arg6: memref<4x32xf32, #tpu.memory_space<vmem>>, %arg7: memref<2xf32, #tpu.memory_space<smem>>, %arg8: memref<32x32xf32, #tpu.memory_space<vmem>>) attributes {dimension_semantics = [], scalar_prefetch = 0 : i64, scratch_operands = 0 : i64, tpu.core_type = #tpu.core_type<tc>} {
    %c0 = arith.constant 0 : index
    %c0_0 = arith.constant 0 : index
    %0 = vector.load %arg0[%c0, %c0_0] : memref<32x32xf32, #tpu.memory_space<vmem>>, vector<32x32xf32>
    %1 = tpu.iota {dimensions = array<i32: 0>} : vector<32x128xi32>
    %c0_1 = arith.constant 0 : index
    %c0_2 = arith.constant 0 : index
    %2 = vector.load %arg1[%c0_1, %c0_2] : memref<1x128xi32, #tpu.memory_space<vmem>>, vector<1x128xi32>
    %3 = vector.broadcast %2 : vector<1x128xi32> to vector<32x128xi32>
    %4 = arith.cmpi eq, %1, %3 : vector<32x128xi32>
    %5 = arith.extui %4 : vector<32x128xi1> to vector<32x128xi32>
    %6 = arith.sitofp %5 : vector<32x128xi32> to vector<32x128xf32>
    %c0_3 = arith.constant 0 : index
    %c0_4 = arith.constant 0 : index
    %7 = vector.load %arg3[%c0_3, %c0_4] : memref<1x128xi32, #tpu.memory_space<vmem>>, vector<1x128xi32>
    %8 = vector.broadcast %7 : vector<1x128xi32> to vector<32x128xi32>
    %9 = arith.cmpi eq, %1, %8 : vector<32x128xi32>
    %10 = arith.extui %9 : vector<32x128xi1> to vector<32x128xi32>
    %11 = arith.sitofp %10 : vector<32x128xi32> to vector<32x128xf32>
    %12 = tpu.iota {dimensions = array<i32: 1>} : vector<128x32xi32>
    %c0_5 = arith.constant 0 : index
    %c0_6 = arith.constant 0 : index
    %13 = vector.load %arg2[%c0_5, %c0_6] : memref<128x1xi32, #tpu.memory_space<vmem>>, vector<128x1xi32>
    %14 = vector.broadcast %13 : vector<128x1xi32> to vector<128x32xi32>
    %15 = arith.cmpi eq, %12, %14 : vector<128x32xi32>
    %16 = arith.extui %15 : vector<128x32xi1> to vector<128x32xi32>
    %17 = arith.sitofp %16 : vector<128x32xi32> to vector<128x32xf32>
    %cst = arith.constant dense<0.000000e+00> : vector<32xf32>
    %18 = vector.multi_reduction <add>, %6, %cst [1] : vector<32x128xf32> to vector<32xf32>
    %19 = vector.shape_cast %18 : vector<32xf32> to vector<32x1xf32>
    %cst_7 = arith.constant 1.000000e+00 : f32
    %20 = vector.broadcast %cst_7 : f32 to vector<32x1xf32>
    %21 = arith.addf %19, %20 : vector<32x1xf32>
    %cst_8 = arith.constant 1.000000e+00 : f32
    %22 = vector.broadcast %cst_8 : f32 to vector<32x1xf32>
    %23 = arith.divf %22, %21 : vector<32x1xf32>
    %cst_9 = arith.constant 0.000000e+00 : f32
    %cst_10 = arith.constant 1.000000e+00 : f32
    %24 = vector.broadcast %cst_9 : f32 to vector<32x1xf32>
    %25 = arith.maximumf %24, %23 : vector<32x1xf32>
    %26 = vector.broadcast %cst_10 : f32 to vector<32x1xf32>
    %27 = arith.minimumf %26, %25 : vector<32x1xf32>
    %cst_11 = arith.constant dense<0.000000e+00> : vector<128x1xf32>
    %28 = tpu.matmul %17, %27, %cst_11 {dimension_numbers = #tpu.dot_dimension_numbers<[1], [0], [0], [1], [0, 0, 1, 1], [], []>} : vector<128x32xf32>, vector<32x1xf32>, vector<128x1xf32> -> vector<128x1xf32>
    %29 = math.exp %28 : vector<128x1xf32>
    %30 = tpu.iota {dimensions = array<i32: 1>} : vector<128x2xi32>
    %c0_i32 = arith.constant 0 : i32
    %31 = vector.broadcast %c0_i32 : i32 to vector<128x2xi32>
    %32 = arith.cmpi eq, %30, %31 : vector<128x2xi32>
    %cst_12 = arith.constant 1.000000e+00 : f32
    %33 = vector.broadcast %cst_12 : f32 to vector<128x2xf32>
    %34 = vector.shape_cast %28 : vector<128x1xf32> to vector<128x1xf32>
    %35 = vector.broadcast %34 : vector<128x1xf32> to vector<128x2xf32>
    %36 = arith.select %32, %33, %35 : vector<128x2xi1>, vector<128x2xf32>
    %37 = vector.broadcast %29 : vector<128x1xf32> to vector<128x2xf32>
    %38 = arith.mulf %37, %36 : vector<128x2xf32>
    %cst_13 = arith.constant dense<0.000000e+00> : vector<32x2xf32>
    %39 = tpu.matmul %11, %38, %cst_13 {dimension_numbers = #tpu.dot_dimension_numbers<[1], [0], [0], [1], [0, 0, 1, 1], [], []>} : vector<32x128xf32>, vector<128x2xf32>, vector<32x2xf32> -> vector<32x2xf32>
    %40 = vector.extract_strided_slice %39 {offsets = [0, 1], sizes = [32, 1], strides = [1, 1]} : vector<32x2xf32> to vector<32x1xf32>
    %41 = vector.extract_strided_slice %39 {offsets = [0, 0], sizes = [32, 1], strides = [1, 1]} : vector<32x2xf32> to vector<32x1xf32>
    %cst_14 = arith.constant 1.000000e-16 : f32
    %42 = vector.broadcast %cst_14 : f32 to vector<32x1xf32>
    %43 = arith.addf %41, %42 : vector<32x1xf32>
    %44 = arith.divf %40, %43 : vector<32x1xf32>
    %c0_15 = arith.constant 0 : index
    %45 = memref.load %arg7[%c0_15] : memref<2xf32, #tpu.memory_space<smem>>
    %46 = vector.broadcast %45 : f32 to vector<32x1xf32>
    %47 = arith.mulf %46, %27 : vector<32x1xf32>
    %c1 = arith.constant 1 : index
    %48 = memref.load %arg7[%c1] : memref<2xf32, #tpu.memory_space<smem>>
    %49 = vector.broadcast %48 : f32 to vector<32x1xf32>
    %50 = arith.mulf %49, %44 : vector<32x1xf32>
    %51 = arith.addf %47, %50 : vector<32x1xf32>
    %c0_16 = arith.constant 0 : index
    %c0_17 = arith.constant 0 : index
    %52 = vector.load %arg6[%c0_16, %c0_17] : memref<4x32xf32, #tpu.memory_space<vmem>>, vector<1x16xf32>
    %c1_18 = arith.constant 1 : index
    %c0_19 = arith.constant 0 : index
    %53 = vector.load %arg6[%c1_18, %c0_19] : memref<4x32xf32, #tpu.memory_space<vmem>>, vector<1x32xf32>
    %c2 = arith.constant 2 : index
    %c0_20 = arith.constant 0 : index
    %54 = vector.load %arg6[%c2, %c0_20] : memref<4x32xf32, #tpu.memory_space<vmem>>, vector<1x32xf32>
    %c3 = arith.constant 3 : index
    %c0_21 = arith.constant 0 : index
    %55 = vector.load %arg6[%c3, %c0_21] : memref<4x32xf32, #tpu.memory_space<vmem>>, vector<1x32xf32>
    %c0_22 = arith.constant 0 : index
    %c0_23 = arith.constant 0 : index
    %56 = vector.load %arg4[%c0_22, %c0_23] : memref<32x16xf32, #tpu.memory_space<vmem>>, vector<32x16xf32>
    %cst_24 = arith.constant dense<0.000000e+00> : vector<32x16xf32>
    %57 = tpu.matmul %0, %56, %cst_24 {dimension_numbers = #tpu.dot_dimension_numbers<[1], [0], [0], [1], [0, 0, 1, 1], [], []>} : vector<32x32xf32>, vector<32x16xf32>, vector<32x16xf32> -> vector<32x16xf32>
    %58 = vector.broadcast %52 : vector<1x16xf32> to vector<32x16xf32>
    %59 = arith.addf %57, %58 : vector<32x16xf32>
    %cst_25 = arith.constant 0.000000e+00 : f32
    %60 = vector.broadcast %cst_25 : f32 to vector<32x16xf32>
    %61 = arith.maximumf %59, %60 : vector<32x16xf32>
    %c0_26 = arith.constant 0 : index
    %c0_27 = arith.constant 0 : index
    %62 = vector.load %arg5[%c0_26, %c0_27] : memref<16x32xf32, #tpu.memory_space<vmem>>, vector<16x32xf32>
    %cst_28 = arith.constant dense<0.000000e+00> : vector<32x32xf32>
    %63 = tpu.matmul %61, %62, %cst_28 {dimension_numbers = #tpu.dot_dimension_numbers<[1], [0], [0], [1], [0, 0, 1, 1], [], []>} : vector<32x16xf32>, vector<16x32xf32>, vector<32x32xf32> -> vector<32x32xf32>
    %64 = vector.broadcast %53 : vector<1x32xf32> to vector<32x32xf32>
    %65 = arith.addf %63, %64 : vector<32x32xf32>
    %66 = vector.broadcast %51 : vector<32x1xf32> to vector<32x32xf32>
    %67 = arith.mulf %66, %65 : vector<32x32xf32>
    %68 = arith.addf %0, %67 : vector<32x32xf32>
    %cst_29 = arith.constant dense<0.000000e+00> : vector<32xf32>
    %69 = vector.multi_reduction <add>, %68, %cst_29 [1] : vector<32x32xf32> to vector<32xf32>
    %70 = vector.shape_cast %69 : vector<32xf32> to vector<32x1xf32>
    %cst_30 = arith.constant 3.200000e+01 : f32
    %71 = vector.broadcast %cst_30 : f32 to vector<32x1xf32>
    %72 = arith.divf %70, %71 : vector<32x1xf32>
    %73 = vector.broadcast %72 : vector<32x1xf32> to vector<32x32xf32>
    %74 = arith.subf %68, %73 : vector<32x32xf32>
    %75 = arith.mulf %74, %74 : vector<32x32xf32>
    %cst_31 = arith.constant dense<0.000000e+00> : vector<32xf32>
    %76 = vector.multi_reduction <add>, %75, %cst_31 [1] : vector<32x32xf32> to vector<32xf32>
    %77 = vector.shape_cast %76 : vector<32xf32> to vector<32x1xf32>
    %cst_32 = arith.constant 3.200000e+01 : f32
    %78 = vector.broadcast %cst_32 : f32 to vector<32x1xf32>
    %79 = arith.divf %77, %78 : vector<32x1xf32>
    %80 = vector.broadcast %72 : vector<32x1xf32> to vector<32x32xf32>
    %81 = arith.subf %68, %80 : vector<32x32xf32>
    %cst_33 = arith.constant 9.99999974E-6 : f32
    %82 = vector.broadcast %cst_33 : f32 to vector<32x1xf32>
    %83 = arith.addf %79, %82 : vector<32x1xf32>
    %84 = math.rsqrt %83 : vector<32x1xf32>
    %85 = vector.broadcast %84 : vector<32x1xf32> to vector<32x32xf32>
    %86 = arith.mulf %81, %85 : vector<32x32xf32>
    %87 = vector.broadcast %54 : vector<1x32xf32> to vector<32x32xf32>
    %88 = arith.mulf %86, %87 : vector<32x32xf32>
    %89 = vector.broadcast %55 : vector<1x32xf32> to vector<32x32xf32>
    %90 = arith.addf %88, %89 : vector<32x32xf32>
    %c0_34 = arith.constant 0 : index
    %c0_35 = arith.constant 0 : index
    %91 = vector.load %arg8[%c0_34, %c0_35] : memref<32x32xf32, #tpu.memory_space<vmem>>, vector<32x32xf32>
    tpu.vector_store %arg8[%c0_34, %c0_35], %90 {strides = array<i32>} : memref<32x32xf32, #tpu.memory_space<vmem>>, vector<32x32xf32>,
    return
  }
}

</mosaic_0001>

<bundles_post_ra>
// kernel: tpu_custom_call.1
= control target key start
LH: loop header
LB: loop body
LE: loop exit
PB: predicated region body
PF: predicated region fallthrough
CT: control target
= control target key end

     0   :  { %13 = vsyncpa [#allocation4], 0  ;;  %s1808_s0 = inlined_call_operand.vmem [shape: f32[32,32], index: 0, kind: input, shape index: {}]   ;;  %s1809_s1 = inlined_call_operand.vmem [shape: s32[1,128], index: 1, kind: input, shape index: {}]   ;;  %s1810_s2 = inlined_call_operand.vmem [shape: s32[128,1], index: 2, kind: input, shape index: {}]   ;;  %s1811_s3 = inlined_call_operand.vmem [shape: s32[1,128], index: 3, kind: input, shape index: {}]   ;;  %s1812_s4 = inlined_call_operand.vmem [shape: f32[32,16], index: 4, kind: input, shape index: {}]   ;;  %s1813_s5 = inlined_call_operand.vmem [shape: f32[16,32], index: 5, kind: input, shape index: {}]   ;;  %s1814_s6 = inlined_call_operand.vmem [shape: f32[4,32], index: 6, kind: input, shape index: {}]   ;;  %s1815_s7 = inlined_call_operand.vmem [shape: f32[2], index: 7, kind: input, shape index: {}]   ;;  %s1816_s8 = inlined_call_operand.hbm [shape: f32[32,32], index: 8, kind: output, shape index: {}]  }
   0x1   :  { %14 = vsyncpa [#allocation3], 0  ;;  %s35_s29 = sshll.u32 %s1815_s7, 4  ;;  %s36_s29 = int_to_ptr.vmem [resolvable:$true] %s35_s29 }
   0x2   :  { %s1439_s30 = scalar_lea.vmem %s36_s29, 16  ;;  %p1444_p1 = scmp.lt.s32.totalorder %s36_s29, %s36_s29 }
   0x3   :  { %p1440_p0 = scmp.ne.s32.totalorder %s36_s29, %s1439_s30  ;;  %p1445_p2 = scmp.lt.s32.totalorder %s1439_s30, %s1439_s30 }
   0x5   :  { %p1446_p3 = por %p1445_p2, %p1444_p1 }
   0x7   :  { %p1447_p4 = pnand %p1446_p3, %p1440_p0 }
   0x9   :  { %1450 = shalt.err (!%p1447_p4)
}
   0xa   :  { %s1477_s9 = smov [#allocation2]  }
   0xb   :  { %38 = dma.vmem_to_smem %s36_s29, 16, %s1477_s9, [#allocation4]  }
   0xc   :  { %1473 = dma.done.wait [#allocation4], 16  }
   0xd   :  { %1474 = vsyncadd [#allocation4], 4294967280 }
   0xe   :  { %42 = sfence }
   0xf   :  { %v47_v0 = vlaneseq  ;;  %v1111_v1 = vld [vmem:[%s1809_s1] ss:$0 sm:$0xff]  ;;  %v1478_v2 = vmov 0   ;;  %v1479_v7 = vmov 0.0   ;;  %v89_v12 = vld [vmem:[%s1810_s2 + $0x8] sm:$0xff]  ;;  %v90_v14 = vld [vmem:[%s1810_s2 + $0x10] sm:$0xff] }
  0x10   :  { %1380 = vset.pattern.permute.xlu1 %v1478_v2  ;;  %1379 = vset.pattern.permute.xlu0 %v1478_v2  ;;  %v88_v13 = vld [vmem:[%s1810_s2] sm:$0xff]  ;;  %v97_v15 = vld [vmem:[%s1810_s2 + $0x48] sm:$0xff]  ;;  %v91_v16 = vld [vmem:[%s1810_s2 + $0x18] sm:$0xff]  ;;  %vm228_vm4 = vcmask 261120   ;;  %s1157_s14 = sld [smem:[#allocation2 + $0x1]]  ;;  %s760_s15 = sld [smem:[#allocation2]] }
  0x11   :  { %v1538_v3 = vshrl.u32 %v47_v0, 7  ;;  %v99_v17 = vld [vmem:[%s1810_s2 + $0x58] sm:$0xff]  ;;  %v92_v18 = vld [vmem:[%s1810_s2 + $0x20] sm:$0xff]  ;;  %v101_v19 = vld [vmem:[%s1810_s2 + $0x68] sm:$0xff]  ;;  %v1606_v37 = vand.u32 127, %v47_v0  ;;  %s1483_s21 = smov [#allocation5]  }
  0x12   :  { %v93_v20 = vld [vmem:[%s1810_s2 + $0x28] sm:$0xff]  ;;  %v103_v21 = vld [vmem:[%s1810_s2 + $0x78] sm:$0xff]  ;;  %v94_v22 = vld [vmem:[%s1810_s2 + $0x30] sm:$0xff]  ;;  %s1099_s22 = sshll.u32 %s1483_s21, 4  ;;  %s1100_s22 = int_to_ptr.vmem [resolvable:$true] %s1099_s22 }
  0x13   :  { %vm57_vm0 = vcmp.eq.s32.totalorder %v1538_v3, %v1111_v1  ;;  %v1542_v4 = vadd.s32 16, %v1538_v3  ;;  %v1545_v5 = vadd.s32 8, %v1538_v3  ;;  %v1548_v6 = vadd.s32 24, %v1538_v3  ;;  %v95_v23 = vld [vmem:[%s1810_s2 + $0x38] sm:$0xff]  ;;  %v96_v24 = vld [vmem:[%s1810_s2 + $0x40] sm:$0xff]  ;;  %v98_v25 = vld [vmem:[%s1810_s2 + $0x50] sm:$0xff]  ;;  %p1456_p6 = scmp.lt.s32.totalorder %s1100_s22, %s1100_s22 }
  0x14   :  { %v1112_v8 = vsel %vm57_vm0, 1.0, %v1479_v7  ;;  %v100_v26 = vld [vmem:[%s1810_s2 + $0x60] sm:$0xff]  ;;  %v102_v27 = vld [vmem:[%s1810_s2 + $0x70] sm:$0xff] }
  0x15   :  { %200 = vadd.xlane.f32.xlu0 %v1112_v8  ;;  %vm59_vm1 = vcmp.eq.s32.totalorder %v1542_v4, %v1111_v1  ;;  %vm58_vm2 = vcmp.eq.s32.totalorder %v1545_v5, %v1111_v1  ;;  %vm60_vm3 = vcmp.eq.s32.totalorder %v1548_v6, %v1111_v1 }
  0x16   :  { %v1114_v9 = vsel %vm59_vm1, 1.0, %v1479_v7  ;;  %v1113_v10 = vsel %vm58_vm2, 1.0, %v1479_v7  ;;  %v1115_v11 = vsel %vm60_vm3, 1.0, %v1479_v7 }
  0x17   :  { %204 = vadd.xlane.f32.xlu1 %v1114_v9 }
  0x19   :  { %202 = vadd.xlane.f32.xlu0 %v1113_v10 }
  0x1b   :  { %206 = vadd.xlane.f32.xlu1 %v1115_v11 }
  0x2c   :  { %108 = vperm.xlu1 %1380, %v89_v12  }
  0x2f   :  { %105 = vperm.xlu0 %1379, %v88_v13  }
  0x30   :  { %111 = vperm.xlu1 %1380, %v90_v14  }
  0x33   :  { %132 = vperm.xlu0 %1379, %v97_v15  }
  0x34   :  { %114 = vperm.xlu1 %1380, %v91_v16  }
  0x37   :  { %138 = vperm.xlu0 %1379, %v99_v17  }
  0x38   :  { %117 = vperm.xlu1 %1380, %v92_v18  }
  0x3b   :  { %144 = vperm.xlu0 %1379, %v101_v19  }
  0x3c   :  { %120 = vperm.xlu1 %1380, %v93_v20  }
  0x3f   :  { %150 = vperm.xlu0 %1379, %v103_v21  }
  0x40   :  { %123 = vperm.xlu1 %1380, %v94_v22  }
  0x44   :  { %126 = vperm.xlu1 %1380, %v95_v23  }
  0x48   :  { %129 = vperm.xlu1 %1380, %v96_v24  }
  0x4c   :  { %135 = vperm.xlu1 %1380, %v98_v25  }
  0x50   :  { %141 = vperm.xlu1 %1380, %v100_v26  }
  0x54   :  { %147 = vperm.xlu1 %1380, %v102_v27  }
  0xa2   :  { %v201_v28 = vpop.xlane.xlu0 %200 }
  0xa3   :  { %v208_v29 = vadd.f32 1.0, %v201_v28 }
  0xa4   :  { %v205_v30 = vpop.xlane.xlu1 %204 }
  0xa5   :  { %1383 = vrcp.f32 %v208_v29  ;;  %v210_v31 = vadd.f32 1.0, %v205_v30 }
  0xa6   :  { %v203_v32 = vpop.xlane.xlu0 %202 }
  0xa7   :  { %1385 = vrcp.f32 %v210_v31  ;;  %v209_v33 = vadd.f32 1.0, %v203_v32 }
  0xa8   :  { %v207_v34 = vpop.xlane.xlu1 %206 }
  0xa9   :  { %1387 = vrcp.f32 %v209_v33  ;;  %v211_v35 = vadd.f32 1.0, %v207_v34 }
  0xab   :  { %1389 = vrcp.f32 %v211_v35 }
  0xac   :  { %v109_v36 = vpop.permute.xlu1 %108 }
  0xad   :  { %vm153_vm6 = vcmp.eq.s32.totalorder %v1606_v37, %v109_v36 }
  0xae   :  { %v106_v38 = vpop.permute.xlu0 %105  ;;  %v1122_v59 = vsel %vm153_vm6, 1.0, %v1479_v7 }
  0xaf   :  { %v1384_v39 = vpop.eup %1383  ;;  %vm152_vm5 = vcmp.eq.s32.totalorder %v1606_v37, %v106_v38 }
  0xb0   :  { %v112_v40 = vpop.permute.xlu1 %111  ;;  %v1121_v41 = vsel %vm152_vm5, 1.0, %v1479_v7  ;;  %v220_v43 = vmax.f32 %v1384_v39, 0.0 }
  0xb1   :  { %v1386_v42 = vpop.eup %1385  ;;  %1232 = vmatprep.mubr.msk.f32.mxu0 %vm228_vm4, %v1121_v41  ;;  %vm154_vm7 = vcmp.eq.s32.totalorder %v1606_v37, %v112_v40 }
  0xb2   :  { %v222_v45 = vmax.f32 %v1386_v42, 0.0  ;;  %v1611_v50 = vmin.f32 %v220_v43, 1.0  ;;  %v1123_v60 = vsel %vm154_vm7, 1.0, %v1479_v7  ;;  %v133_v62 = vpop.permute.xlu0 %132  ;;  %vm454_vm7 = vcmp.eq.s32.totalorder %v1606_v37, 0 }
  0xb3   :  { %v1388_v44 = vpop.eup %1387  ;;  %vm161_vm14 = vcmp.eq.s32.totalorder %v1606_v37, %v133_v62 }
  0xb4   :  { %v221_v46 = vmax.f32 %v1388_v44, 0.0  ;;  %v115_v47 = vpop.permute.xlu1 %114  ;;  %v1615_v52 = vmin.f32 %v222_v45, 1.0  ;;  %v1130_v14 = vsel %vm161_vm14, 1.0, %v1479_v7 }
  0xb5   :  { %v1390_v48 = vpop.eup %1389  ;;  %vm155_vm8 = vcmp.eq.s32.totalorder %v1606_v37, %v115_v47 }
  0xb6   :  { %v223_v49 = vmax.f32 %v1390_v48, 0.0  ;;  %v1613_v51 = vmin.f32 %v221_v46, 1.0  ;;  %v1124_v63 = vsel %vm155_vm8, 1.0, %v1479_v7  ;;  %v139_v9 = vpop.permute.xlu0 %138 }
  0xb7   :  { %vm163_vm0 = vcmp.eq.s32.totalorder %v1606_v37, %v139_v9 }
  0xb8   :  { %v1617_v53 = vmin.f32 %v223_v49, 1.0  ;;  %v118_v54 = vpop.permute.xlu1 %117  ;;  %v1318_v55 = vpack.c.bf16 %v1613_v51, %v1611_v50  ;;  %v1132_v18 = vsel %vm163_vm0, 1.0, %v1479_v7 }
  0xb9   :  { %vm156_vm9 = vcmp.eq.s32.totalorder %v1606_v37, %v118_v54 }
  0xba   :  { %1319 = vmatprep.subr.bf16.mxu0 %v1318_v55  ;;  %v1322_v56 = vpack.c.bf16 %v1617_v53, %v1615_v52  ;;  %v1125_v0 = vsel %vm156_vm9, 1.0, %v1479_v7  ;;  %v145_v15 = vpop.permute.xlu0 %144 }
  0xbb   :  { %1321 = vmatpush3.bf16.msra.mxu0 %v1318_v55  ;;  %vm165_vm2 = vcmp.eq.s32.totalorder %v1606_v37, %v145_v15 }
  0xbc   :  { %v121_v57 = vpop.permute.xlu1 %120  ;;  %1323 = vmatprep.subr.bf16.mxu0 %v1322_v56  ;;  %v1134_v21 = vsel %vm165_vm2, 1.0, %v1479_v7 }
  0xbd   :  { %vm157_vm10 = vcmp.eq.s32.totalorder %v1606_v37, %v121_v57 }
  0xbe   :  { %v1126_v2 = vsel %vm157_vm10, 1.0, %v1479_v7  ;;  %v151_v20 = vpop.permute.xlu0 %150 }
  0xbf   :  { %1325 = vmatpush3.bf16.msra.mxu0 %v1322_v56  ;;  %vm167_vm5 = vcmp.eq.s32.totalorder %v1606_v37, %v151_v20  ;;  %v781_v20 = vld [vmem:[%s1812_s4 + $0x8] sm:$0xff] }
  0xc0   :  { %v124_v58 = vpop.permute.xlu1 %123  ;;  %v1136_v23 = vsel %vm167_vm5, 1.0, %v1479_v7 }
  0xc1   :  { %vm158_vm11 = vcmp.eq.s32.totalorder %v1606_v37, %v124_v58 }
  0xc2   :  { %1233 = vmatmul.mubr.msk.f32.vlgmr.msra.gmra.mrb[0].mxu0 %vm228_vm4, %v1122_v59  ;;  %v1127_v8 = vsel %vm158_vm11, 1.0, %v1479_v7  ;;  %vm895_vm11 = vcmask 130048  }
  0xc3   :  { %1235 = vmatprep.mubr.msk.f32.mxu0 %vm228_vm4, %v1123_v60 }
  0xc4   :  { %v127_v61 = vpop.permute.xlu1 %126 }
  0xc5   :  { %vm159_vm12 = vcmp.eq.s32.totalorder %v1606_v37, %v127_v61 }
  0xc6   :  { %1236 = vmatmul.mubr.msk.f32.gmra.mrb[2].mxu0 %vm228_vm4, %v1124_v63  ;;  %v1128_v11 = vsel %vm159_vm12, 1.0, %v1479_v7 }
  0xc7   :  { %1238 = vmatprep.mubr.msk.f32.mxu0 %vm228_vm4, %v1125_v0 }
  0xc8   :  { %v130_v1 = vpop.permute.xlu1 %129 }
  0xc9   :  { %vm160_vm13 = vcmp.eq.s32.totalorder %v1606_v37, %v130_v1 }
  0xca   :  { %1239 = vmatmul.mubr.msk.f32.gmra.mrb[4].mxu0 %vm228_vm4, %v1126_v2  ;;  %v1129_v12 = vsel %vm160_vm13, 1.0, %v1479_v7 }
  0xcb   :  { %1241 = vmatprep.mubr.msk.f32.mxu0 %vm228_vm4, %v1127_v8 }
  0xcc   :  { %v136_v10 = vpop.permute.xlu1 %135 }
  0xcd   :  { %vm162_vm15 = vcmp.eq.s32.totalorder %v1606_v37, %v136_v10 }
  0xce   :  { %1242 = vmatmul.mubr.msk.f32.gmra.mrb[6].mxu0 %vm228_vm4, %v1128_v11  ;;  %v1131_v16 = vsel %vm162_vm15, 1.0, %v1479_v7 }
  0xcf   :  { %1244 = vmatprep.mubr.msk.f32.mxu0 %vm228_vm4, %v1129_v12 }
  0xd0   :  { %v142_v13 = vpop.permute.xlu1 %141 }
  0xd1   :  { %vm164_vm1 = vcmp.eq.s32.totalorder %v1606_v37, %v142_v13 }
  0xd2   :  { %1245 = vmatmul.mubr.msk.f32.gmra.mrb[8].mxu0 %vm228_vm4, %v1130_v14  ;;  %v1133_v19 = vsel %vm164_vm1, 1.0, %v1479_v7 }
  0xd3   :  { %1247 = vmatprep.mubr.msk.f32.mxu0 %vm228_vm4, %v1131_v16 }
  0xd4   :  { %v148_v17 = vpop.permute.xlu1 %147 }
  0xd5   :  { %vm166_vm3 = vcmp.eq.s32.totalorder %v1606_v37, %v148_v17  ;;  %v1671_v17 = vld [vmem:[%s1811_s3] ss:$0 sm:$0xff] }
  0xd6   :  { %1248 = vmatmul.mubr.msk.f32.gmra.mrb[10].mxu0 %vm228_vm4, %v1132_v18  ;;  %v1135_v22 = vsel %vm166_vm3, 1.0, %v1479_v7  ;;  %vm74_vm6 = vcmp.eq.s32.totalorder %v1538_v3, %v1671_v17  ;;  %v1480_v18 = vmov 1.0   ;;  %v783_v3 = vld [vmem:[%s1812_s4 + $0x18] sm:$0xff]  ;;  %vm75_vm8 = vcmp.eq.s32.totalorder %v1545_v5, %v1671_v17  ;;  %v889_v37 = vld [vmem:[%s1813_s5] sm:$0xff]  ;;  %v890_v5 = vld [vmem:[%s1813_s5 + $0x8] sm:$0xff]  ;;  %s1482_s5 = smov 1  }
  0xd7   :  { %1250 = vmatprep.mubr.msk.f32.mxu0 %vm228_vm4, %v1133_v19  ;;  %1288 = vmatprep.mubr.msk.f32.mxu1 %vm74_vm6, %v1480_v18  ;;  %v780_v19 = vld [vmem:[%s1812_s4] sm:$0xff]  ;;  %vm76_vm9 = vcmp.eq.s32.totalorder %v1542_v4, %v1671_v17  ;;  %vm77_vm10 = vcmp.eq.s32.totalorder %v1548_v6, %v1671_v17 }
  0xd8   :  { %v1158_v4 = vld [vmem:[%s1814_s6] ss:$0 sm:$0xff] }
  0xda   :  { %1251 = vmatmul.mubr.msk.f32.gmra.mrb[12].mxu0 %vm228_vm4, %v1134_v21  ;;  %v782_v21 = vld [vmem:[%s1812_s4 + $0x10] sm:$0xff] }
  0xdb   :  { %1253 = vmatprep.mubr.msk.f32.mxu0 %vm228_vm4, %v1135_v22  ;;  %v1358_v22 = vpack.c.bf16 %v781_v20, %v780_v19 }
  0xdd   :  { %1359 = vmatprep.subr.bf16.mxu0 %v1358_v22 }
  0xde   :  { %1254 = vmatmul.mubr.msk.f32.gmra.mrb[14].mxu0 %vm228_vm4, %v1136_v23  ;;  %v1691_v23 = vld [vmem:[%s1808_s0] sm:$0xff] }
  0xdf   :  { %1302 = vmatprep.mubr.msk.f32.mxu0 %vm228_vm4, %v1691_v23  ;;  %1361 = vmatpush3.bf16.msra.mxu0 %v1358_v22 }
 0x195   :  { %v1234_v24 = vpop.f32.mrb[0].mxu0 }
 0x196   :  { %462 = vperm.xlu0 %1379, %v1234_v24   ;;  %v343_v25 = vpop.f32.mrb[1].mxu0  ;;  %v424_v26 = vmul.f32 1.442695, %v1234_v24  ;;  %v1362_v24 = vpack.c.bf16 %v783_v3, %v782_v21 }
 0x197   :  { %457 = vperm.xlu1 %1380, %v343_v25   ;;  %v422_v27 = vmul.f32 1.442695, %v343_v25  ;;  %v1698_v25 = vld [vmem:[%s1808_s0 + $0x8] sm:$0xff] }
 0x198   :  { %1391 = vpow2.f32 %v424_v26  ;;  %1363 = vmatprep.subr.bf16.mxu0 %v1362_v24  ;;  %v1703_v26 = vld [vmem:[%s1808_s0 + $0x10] sm:$0xff] }
 0x199   :  { %v1237_v28 = vpop.f32.mrb[2].mxu0  ;;  %1393 = vpow2.f32 %v422_v27  ;;  %1365 = vmatpush3.bf16.msra.mxu0 %v1362_v24  ;;  %v1712_v27 = vld [vmem:[%s1808_s0 + $0x18] sm:$0xff] }
 0x19a   :  { %472 = vperm.xlu0 %1379, %v1237_v28   ;;  %v353_v29 = vpop.f32.mrb[3].mxu0  ;;  %v428_v32 = vmul.f32 1.442695, %v1237_v28 }
 0x19b   :  { %467 = vperm.xlu1 %1380, %v353_v29   ;;  %v426_v7 = vmul.f32 1.442695, %v353_v29 }
 0x19c   :  { %1395 = vpow2.f32 %v428_v32  ;;  %1303 = vmatmul.mubr.msk.f32.vlgmr.msra.gmra.mrb[16].mxu0 %vm228_vm4, %v1698_v25 }
 0x19d   :  { %v1240_v30 = vpop.f32.mrb[4].mxu0  ;;  %1397 = vpow2.f32 %v426_v7  ;;  %1305 = vmatprep.mubr.msk.f32.mxu0 %vm228_vm4, %v1703_v26 }
 0x19e   :  { %482 = vperm.xlu0 %1379, %v1240_v30   ;;  %v363_v31 = vpop.f32.mrb[5].mxu0  ;;  %v432_v40 = vmul.f32 1.442695, %v1240_v30 }
 0x19f   :  { %477 = vperm.xlu1 %1380, %v363_v31   ;;  %v430_v41 = vmul.f32 1.442695, %v363_v31 }
 0x1a0   :  { %1399 = vpow2.f32 %v432_v40  ;;  %1306 = vmatmul.mubr.msk.f32.gmra.mrb[18].mxu0 %vm228_vm4, %v1712_v27 }
 0x1a1   :  { %v1243_v33 = vpop.f32.mrb[6].mxu0  ;;  %1401 = vpow2.f32 %v430_v41 }
 0x1a2   :  { %492 = vperm.xlu0 %1379, %v1243_v33   ;;  %v373_v34 = vpop.f32.mrb[7].mxu0  ;;  %v1392_v35 = vpop.eup %1391  ;;  %v436_v48 = vmul.f32 1.442695, %v1243_v33 }
 0x1a3   :  { %487 = vperm.xlu1 %1380, %v373_v34   ;;  %v1394_v38 = vpop.eup %1393  ;;  %v434_v49 = vmul.f32 1.442695, %v373_v34 }
 0x1a4   :  { %1403 = vpow2.f32 %v436_v48 }
 0x1a5   :  { %v1246_v36 = vpop.f32.mrb[8].mxu0  ;;  %1405 = vpow2.f32 %v434_v49 }
 0x1a6   :  { %558 = vperm.xlu0 %1379, %v1392_v35   ;;  %v383_v39 = vpop.f32.mrb[9].mxu0  ;;  %v1396_v44 = vpop.eup %1395  ;;  %v440_v58 = vmul.f32 1.442695, %v1246_v36 }
 0x1a7   :  { %553 = vperm.xlu1 %1380, %v1394_v38   ;;  %v1398_v46 = vpop.eup %1397  ;;  %v438_v59 = vmul.f32 1.442695, %v383_v39 }
 0x1a8   :  { %1407 = vpow2.f32 %v440_v58 }
 0x1a9   :  { %v1249_v42 = vpop.f32.mrb[10].mxu0  ;;  %1409 = vpow2.f32 %v438_v59 }
 0x1aa   :  { %502 = vperm.xlu0 %1379, %v1246_v36   ;;  %v393_v43 = vpop.f32.mrb[11].mxu0  ;;  %v1400_v56 = vpop.eup %1399  ;;  %v444_v60 = vmul.f32 1.442695, %v1249_v42 }
 0x1ab   :  { %497 = vperm.xlu1 %1380, %v383_v39   ;;  %v1402_v57 = vpop.eup %1401  ;;  %v442_v61 = vmul.f32 1.442695, %v393_v43 }
 0x1ac   :  { %1411 = vpow2.f32 %v444_v60 }
 0x1ad   :  { %v1252_v45 = vpop.f32.mrb[12].mxu0  ;;  %1413 = vpow2.f32 %v442_v61 }
 0x1ae   :  { %568 = vperm.xlu0 %1379, %v1396_v44   ;;  %v403_v47 = vpop.f32.mrb[13].mxu0  ;;  %v1404_v62 = vpop.eup %1403  ;;  %v448_v0 = vmul.f32 1.442695, %v1252_v45 }
 0x1af   :  { %563 = vperm.xlu1 %1380, %v1398_v46   ;;  %v1406_v63 = vpop.eup %1405  ;;  %v446_v1 = vmul.f32 1.442695, %v403_v47 }
 0x1b0   :  { %1415 = vpow2.f32 %v448_v0 }
 0x1b1   :  { %v1255_v54 = vpop.f32.mrb[14].mxu0  ;;  %1417 = vpow2.f32 %v446_v1 }
 0x1b2   :  { %512 = vperm.xlu0 %1379, %v1249_v42   ;;  %v413_v55 = vpop.f32.mrb[15].mxu0  ;;  %v452_v2 = vmul.f32 1.442695, %v1255_v54  ;;  %v1408_v9 = vpop.eup %1407 }
 0x1b3   :  { %507 = vperm.xlu1 %1380, %v393_v43   ;;  %v450_v8 = vmul.f32 1.442695, %v413_v55  ;;  %v1410_v10 = vpop.eup %1409 }
 0x1b4   :  { %1419 = vpow2.f32 %v452_v2 }
 0x1b5   :  { %1421 = vpow2.f32 %v450_v8 }
 0x1b6   :  { %578 = vperm.xlu0 %1379, %v1400_v56   ;;  %v1412_v11 = vpop.eup %1411 }
 0x1b7   :  { %573 = vperm.xlu1 %1380, %v1402_v57   ;;  %v1414_v12 = vpop.eup %1413 }
 0x1ba   :  { %522 = vperm.xlu0 %1379, %v1252_v45   ;;  %v1416_v13 = vpop.eup %1415 }
 0x1bb   :  { %517 = vperm.xlu1 %1380, %v403_v47   ;;  %v1418_v14 = vpop.eup %1417 }
 0x1be   :  { %588 = vperm.xlu0 %1379, %v1404_v62   ;;  %v1420_v15 = vpop.eup %1419 }
 0x1bf   :  { %583 = vperm.xlu1 %1380, %v1406_v63   ;;  %v1422_v16 = vpop.eup %1421 }
 0x1c2   :  { %532 = vperm.xlu0 %1379, %v1255_v54  }
 0x1c3   :  { %527 = vperm.xlu1 %1380, %v413_v55  }
 0x1c6   :  { %598 = vperm.xlu0 %1379, %v1408_v9  }
 0x1c7   :  { %593 = vperm.xlu1 %1380, %v1410_v10  }
 0x1ca   :  { %608 = vperm.xlu0 %1379, %v1412_v11  }
 0x1cb   :  { %603 = vperm.xlu1 %1380, %v1414_v12  }
 0x1ce   :  { %618 = vperm.xlu0 %1379, %v1416_v13  }
 0x1cf   :  { %613 = vperm.xlu1 %1380, %v1418_v14  }
 0x1d2   :  { %628 = vperm.xlu0 %1379, %v1420_v15  }
 0x1d3   :  { %623 = vperm.xlu1 %1380, %v1422_v16  }
 0x215   :  { %v463_v28 = vpop.permute.xlu0 %462 }
 0x216   :  { %v458_v29 = vpop.permute.xlu1 %457  ;;  %v536_v35 = vsel %vm454_vm7, 1.0, %v463_v28 }
 0x217   :  { %v535_v38 = vsel %vm454_vm7, 1.0, %v458_v29 }
 0x219   :  { %v473_v30 = vpop.permute.xlu0 %472 }
 0x21a   :  { %v468_v31 = vpop.permute.xlu1 %467  ;;  %v538_v45 = vsel %vm454_vm7, 1.0, %v473_v30 }
 0x21b   :  { %v537_v47 = vsel %vm454_vm7, 1.0, %v468_v31 }
 0x21d   :  { %v483_v32 = vpop.permute.xlu0 %482 }
 0x21e   :  { %v478_v7 = vpop.permute.xlu1 %477  ;;  %v540_v58 = vsel %vm454_vm7, 1.0, %v483_v32 }
 0x21f   :  { %v539_v60 = vsel %vm454_vm7, 1.0, %v478_v7 }
 0x221   :  { %v493_v33 = vpop.permute.xlu0 %492 }
 0x222   :  { %v488_v34 = vpop.permute.xlu1 %487  ;;  %v542_v8 = vsel %vm454_vm7, 1.0, %v493_v33 }
 0x223   :  { %v541_v10 = vsel %vm454_vm7, 1.0, %v488_v34 }
 0x225   :  { %v559_v36 = vpop.permute.xlu0 %558 }
 0x226   :  { %v632_v39 = vmul.f32 %v559_v36, %v536_v35  ;;  %v554_v40 = vpop.permute.xlu1 %553 }
 0x227   :  { %v631_v41 = vmul.f32 %v554_v40, %v535_v38 }
 0x229   :  { %v503_v42 = vpop.permute.xlu0 %502  ;;  %v1326_v43 = vpack.c.bf16 %v632_v39, %v631_v41 }
 0x22a   :  { %v498_v44 = vpop.permute.xlu1 %497  ;;  %v544_v19 = vsel %vm454_vm7, 1.0, %v503_v42 }
 0x22b   :  { %1327 = vmatprep.subr.bf16.mxu1 %v1326_v43  ;;  %v543_v21 = vsel %vm454_vm7, 1.0, %v498_v44 }
 0x22c   :  { %1329 = vmatpush3.bf16.msra.mxu1 %v1326_v43 }
 0x22d   :  { %v569_v46 = vpop.permute.xlu0 %568 }
 0x22e   :  { %v634_v48 = vmul.f32 %v569_v46, %v538_v45  ;;  %v564_v49 = vpop.permute.xlu1 %563 }
 0x22f   :  { %v633_v54 = vmul.f32 %v564_v49, %v537_v47 }
 0x231   :  { %v1330_v55 = vpack.c.bf16 %v634_v48, %v633_v54  ;;  %v513_v56 = vpop.permute.xlu0 %512  ;;  %v1366_v54 = vpack.c.bf16 %v890_v5, %v889_v37 }
 0x232   :  { %v508_v57 = vpop.permute.xlu1 %507  ;;  %v546_v28 = vsel %vm454_vm7, 1.0, %v513_v56 }
 0x233   :  { %1331 = vmatprep.subr.bf16.mxu1 %v1330_v55  ;;  %v545_v31 = vsel %vm454_vm7, 1.0, %v508_v57 }
 0x234   :  { %1333 = vmatpush3.bf16.msra.mxu1 %v1330_v55 }
 0x235   :  { %v579_v59 = vpop.permute.xlu0 %578 }
 0x236   :  { %v636_v61 = vmul.f32 %v579_v59, %v540_v58  ;;  %v574_v62 = vpop.permute.xlu1 %573 }
 0x237   :  { %v635_v63 = vmul.f32 %v574_v62, %v539_v60 }
 0x239   :  { %v1334_v0 = vpack.c.bf16 %v636_v61, %v635_v63  ;;  %v523_v1 = vpop.permute.xlu0 %522 }
 0x23a   :  { %v518_v2 = vpop.permute.xlu1 %517  ;;  %v548_v34 = vsel %vm454_vm7, 1.0, %v523_v1 }
 0x23b   :  { %1335 = vmatprep.subr.bf16.mxu1 %v1334_v0  ;;  %v547_v38 = vsel %vm454_vm7, 1.0, %v518_v2 }
 0x23c   :  { %1337 = vmatpush3.bf16.msra.mxu1 %v1334_v0  ;;  %v1481_v0 = vmov 1  }
 0x23d   :  { %v589_v9 = vpop.permute.xlu0 %588  ;;  %1381 = vset.pattern.permute.xlu0 %v1481_v0  ;;  %1382 = vset.pattern.permute.xlu1 %v1481_v0 }
 0x23e   :  { %v638_v11 = vmul.f32 %v589_v9, %v542_v8  ;;  %v584_v12 = vpop.permute.xlu1 %583 }
 0x23f   :  { %v637_v13 = vmul.f32 %v584_v12, %v541_v10 }
 0x241   :  { %v1338_v14 = vpack.c.bf16 %v638_v11, %v637_v13  ;;  %v533_v15 = vpop.permute.xlu0 %532 }
 0x242   :  { %v528_v16 = vpop.permute.xlu1 %527  ;;  %v550_v42 = vsel %vm454_vm7, 1.0, %v533_v15 }
 0x243   :  { %1339 = vmatprep.subr.bf16.mxu1 %v1338_v14  ;;  %v549_v45 = vsel %vm454_vm7, 1.0, %v528_v16 }
 0x244   :  { %1341 = vmatpush3.bf16.msra.mxu1 %v1338_v14 }
 0x245   :  { %v599_v20 = vpop.permute.xlu0 %598 }
 0x246   :  { %v640_v22 = vmul.f32 %v599_v20, %v544_v19  ;;  %v594_v3 = vpop.permute.xlu1 %593 }
 0x247   :  { %v639_v24 = vmul.f32 %v594_v3, %v543_v21 }
 0x249   :  { %v1342_v29 = vpack.c.bf16 %v640_v22, %v639_v24  ;;  %v609_v30 = vpop.permute.xlu0 %608  ;;  %v767_v24 = vstv %s1157_s14 }
 0x24a   :  { %v642_v32 = vmul.f32 %v609_v30, %v546_v28  ;;  %v604_v7 = vpop.permute.xlu1 %603 }
 0x24b   :  { %v641_v33 = vmul.f32 %v604_v7, %v545_v31  ;;  %1343 = vmatprep.subr.bf16.mxu1 %v1342_v29 }
 0x24c   :  { %1345 = vmatpush3.bf16.msra.mxu1 %v1342_v29  ;;  %v761_v29 = vstv %s760_s15 }
 0x24d   :  { %v1346_v35 = vpack.c.bf16 %v642_v32, %v641_v33  ;;  %v619_v36 = vpop.permute.xlu0 %618  ;;  %v763_v32 = vmul.f32 %v761_v29, %v1613_v51 }
 0x24e   :  { %v644_v39 = vmul.f32 %v619_v36, %v548_v34  ;;  %v614_v40 = vpop.permute.xlu1 %613  ;;  %v762_v34 = vmul.f32 %v761_v29, %v1611_v50  ;;  %v1163_v50 = vld [vmem:[%s1814_s6 + $0x1] ss:$0 sm:$0xff] }
 0x24f   :  { %v643_v41 = vmul.f32 %v614_v40, %v547_v38  ;;  %1347 = vmatprep.subr.bf16.mxu1 %v1346_v35 }
 0x250   :  { %1349 = vmatpush3.bf16.msra.mxu1 %v1346_v35 }
 0x251   :  { %v1350_v43 = vpack.c.bf16 %v644_v39, %v643_v41  ;;  %v629_v44 = vpop.permute.xlu0 %628 }
 0x252   :  { %v646_v46 = vmul.f32 %v629_v44, %v550_v42  ;;  %v624_v47 = vpop.permute.xlu1 %623 }
 0x253   :  { %v645_v48 = vmul.f32 %v624_v47, %v549_v45  ;;  %1351 = vmatprep.subr.bf16.mxu1 %v1350_v43  ;;  %v764_v45 = vmul.f32 %v761_v29, %v1615_v52 }
 0x254   :  { %1353 = vmatpush3.bf16.msra.mxu1 %v1350_v43  ;;  %v765_v43 = vmul.f32 %v761_v29, %v1617_v53 }
 0x255   :  { %v1354_v49 = vpack.c.bf16 %v646_v46, %v645_v48 }
 0x257   :  { %1355 = vmatprep.subr.bf16.mxu1 %v1354_v49 }
 0x258   :  { %1357 = vmatpush3.bf16.msra.mxu1 %v1354_v49 }
 0x259   :  { %1367 = vmatprep.subr.bf16.mxu1 %v1366_v54 }
 0x25b   :  { %1289 = vmatmul.mubr.msk.f32.vlgmr.msra.gmra.mrb[0].mxu1 %vm75_vm8, %v1480_v18 }
 0x25c   :  { %1291 = vmatprep.mubr.msk.f32.mxu1 %vm76_vm9, %v1480_v18  ;;  %1369 = vmatpush3.bf16.msra.mxu1 %v1366_v54 }
 0x25f   :  { %1292 = vmatmul.mubr.msk.f32.gmra.mrb[2].mxu1 %vm77_vm10, %v1480_v18 }
 0x26f   :  { %v1304_v55 = vpop.f32.mrb[16].mxu0 }
 0x270   :  { %v872_v56 = vadd.f32 %v1304_v55, %v1158_v4  ;;  %v866_v6 = vpop.f32.mrb[17].mxu0 }
 0x271   :  { %v867_v17 = vadd.f32 %v1158_v4, %v866_v6 }
 0x272   :  { %v886_v18 = vmax.f32 %v872_v56, 0.0 }
 0x273   :  { %v885_v57 = vmax.f32 %v867_v17, 0.0  ;;  %v1307_v58 = vpop.f32.mrb[18].mxu0 }
 0x274   :  { %v882_v59 = vadd.f32 %v1307_v58, %v1158_v4  ;;  %v876_v60 = vpop.f32.mrb[19].mxu0 }
 0x275   :  { %v877_v61 = vadd.f32 %v1158_v4, %v876_v60  ;;  %1312 = vmatprep.mubr.msk.f32.mxu1 %vm895_vm11, %v885_v57 }
 0x276   :  { %v888_v62 = vmax.f32 %v882_v59, 0.0  ;;  %1313 = vmatmul.mubr.msk.f32.vlgmr.msra.gmra.mrb[4].mxu1 %vm895_vm11, %v886_v18 }
 0x277   :  { %v887_v63 = vmax.f32 %v877_v61, 0.0 }
 0x279   :  { %1315 = vmatprep.mubr.msk.f32.mxu1 %vm895_vm11, %v887_v63 }
 0x27a   :  { %1316 = vmatmul.mubr.msk.f32.gmra.mrb[6].mxu1 %vm895_vm11, %v888_v62 }
 0x32e   :  { %v1290_v1 = vpop.f32.mrb[0].mxu1 }
 0x32f   :  { %v733_v2 = vadd.f32 1e-16, %v1290_v1  ;;  %v713_v8 = vpop.f32.mrb[1].mxu1 }
 0x330   :  { %v732_v9 = vadd.f32 1e-16, %v713_v8 }
 0x331   :  { %742 = vrot.lane.b32.xlu0 %v733_v2, %s1482_s5 }
 0x332   :  { %740 = vrot.lane.b32.xlu1 %v732_v9, %s1482_s5  ;;  %v1293_v10 = vpop.f32.mrb[2].mxu1 }
 0x333   :  { %v735_v11 = vadd.f32 1e-16, %v1293_v10  ;;  %v723_v12 = vpop.f32.mrb[3].mxu1 }
 0x334   :  { %v734_v13 = vadd.f32 1e-16, %v723_v12 }
 0x335   :  { %746 = vrot.lane.b32.xlu0 %v735_v11, %s1482_s5 }
 0x336   :  { %744 = vrot.lane.b32.xlu1 %v734_v13, %s1482_s5 }
 0x349   :  { %v1314_v14 = vpop.f32.mrb[4].mxu1 }
 0x34a   :  { %v974_v15 = vpop.f32.mrb[5].mxu1  ;;  %v980_v48 = vadd.f32 %v1314_v14, %v1163_v50 }
 0x34b   :  { %v975_v49 = vadd.f32 %v1163_v50, %v974_v15 }
 0x34d   :  { %v1317_v16 = vpop.f32.mrb[6].mxu1 }
 0x34e   :  { %v984_v42 = vpop.f32.mrb[7].mxu1  ;;  %v990_v57 = vadd.f32 %v1317_v16, %v1163_v50 }
 0x34f   :  { %v985_v55 = vadd.f32 %v1163_v50, %v984_v42 }
 0x3a3   :  { %v743_v19 = vpop.permute.xlu0 %742 }
 0x3a4   :  { %1423 = vrcp.f32 %v743_v19  ;;  %v741_v20 = vpop.permute.xlu1 %740 }
 0x3a5   :  { %1425 = vrcp.f32 %v741_v20 }
 0x3a7   :  { %v747_v21 = vpop.permute.xlu0 %746 }
 0x3a8   :  { %1427 = vrcp.f32 %v747_v21  ;;  %v745_v22 = vpop.permute.xlu1 %744 }
 0x3a9   :  { %1429 = vrcp.f32 %v745_v22 }
 0x3ae   :  { %v1424_v3 = vpop.eup %1423 }
 0x3af   :  { %v1426_v28 = vpop.eup %1425  ;;  %v755_v30 = vmul.f32 %v1424_v3, %v1290_v1 }
 0x3b0   :  { %v753_v31 = vmul.f32 %v1426_v28, %v713_v8 }
 0x3b1   :  { %v769_v7 = vmul.f32 %v767_v24, %v755_v30 }
 0x3b2   :  { %v1428_v33 = vpop.eup %1427  ;;  %v768_v35 = vmul.f32 %v767_v24, %v753_v31 }
 0x3b3   :  { %v1430_v36 = vpop.eup %1429  ;;  %v773_v38 = vadd.f32 %v769_v7, %v763_v32  ;;  %v759_v39 = vmul.f32 %v1428_v33, %v1293_v10 }
 0x3b4   :  { %v772_v40 = vadd.f32 %v768_v35, %v762_v34  ;;  %v757_v41 = vmul.f32 %v1430_v36, %v723_v12 }
 0x3b5   :  { %1000 = vperm.xlu0 %1381, %v773_v38   ;;  %v771_v44 = vmul.f32 %v767_v24, %v759_v39  ;;  %v1168_v39 = vld [vmem:[%s1814_s6 + $0x2] ss:$0 sm:$0xff] }
 0x3b6   :  { %995 = vperm.xlu1 %1382, %v772_v40   ;;  %v770_v46 = vmul.f32 %v767_v24, %v757_v41 }
 0x3b7   :  { %v775_v51 = vadd.f32 %v771_v44, %v765_v43  ;;  %v1169_v43 = vld [vmem:[%s1814_s6 + $0x3] ss:$0 sm:$0xff]  ;;  %s1451_s6 = scalar_lea.vmem %s1100_s22, 512 }
 0x3b8   :  { %v774_v47 = vadd.f32 %v770_v46, %v764_v45  ;;  %p1452_p5 = scmp.ne.s32.totalorder %s1100_s22, %s1451_s6  ;;  %p1457_p7 = scmp.lt.s32.totalorder %s1451_s6, %s1451_s6 }
 0x3ba   :  { %1005 = vperm.xlu1 %1382, %v774_v47   ;;  %p1458_p8 = por %p1457_p7, %p1456_p6 }
 0x3bc   :  { %p1459_p9 = pnand %p1458_p8, %p1452_p5 }
 0x3be   :  { %1010 = vperm.xlu1 %1382, %v775_v51  }
 0x434   :  { %v1001_v37 = vpop.permute.xlu0 %1000 }
 0x435   :  { %v1014_v5 = vmul.f32 %v1001_v37, %v980_v48  ;;  %v996_v54 = vpop.permute.xlu1 %995 }
 0x436   :  { %v1013_v4 = vmul.f32 %v996_v54, %v975_v49 }
 0x437   :  { %v1018_v53 = vadd.f32 %v1014_v5, %v1698_v25 }
 0x438   :  { %v1017_v52 = vadd.f32 %v1013_v4, %v1691_v23 }
 0x439   :  { %v1006_v56 = vpop.permute.xlu1 %1005  ;;  %v1024_v6 = vsel %vm228_vm4, %v1018_v53, 0.0 }
 0x43a   :  { %v1015_v17 = vmul.f32 %v1006_v56, %v985_v55  ;;  %1025 = vadd.xlane.f32.xlu1 %v1024_v6  ;;  %v1021_v18 = vsel %vm228_vm4, %v1017_v52, 0.0 }
 0x43b   :  { %1022 = vadd.xlane.f32.xlu0 %v1021_v18 }
 0x43c   :  { %v1019_v58 = vadd.f32 %v1015_v17, %v1703_v26 }
 0x43d   :  { %v1011_v59 = vpop.permute.xlu1 %1010 }
 0x43e   :  { %v1016_v60 = vmul.f32 %v1011_v59, %v990_v57  ;;  %v1027_v61 = vsel %vm228_vm4, %v1019_v58, 0.0 }
 0x43f   :  { %1028 = vadd.xlane.f32.xlu0 %v1027_v61 }
 0x440   :  { %v1020_v25 = vadd.f32 %v1016_v60, %v1712_v27 }
 0x442   :  { %v1030_v23 = vsel %vm228_vm4, %v1020_v25, 0.0 }
 0x443   :  { %1031 = vadd.xlane.f32.xlu0 %v1030_v23 }
 0x4c7   :  { %v1026_v62 = vpop.xlane.xlu1 %1025 }
 0x4c8   :  { %v1035_v63 = vmul.f32 0.03125, %v1026_v62  ;;  %v1023_v0 = vpop.xlane.xlu0 %1022 }
 0x4c9   :  { %v1034_v1 = vmul.f32 0.03125, %v1023_v0 }
 0x4ca   :  { %v1039_v2 = vsub.f32 %v1018_v53, %v1035_v63 }
 0x4cb   :  { %v1038_v8 = vsub.f32 %v1017_v52, %v1034_v1 }
 0x4cc   :  { %v1029_v9 = vpop.xlane.xlu0 %1028  ;;  %v1043_v10 = vmul.f32 %v1039_v2, %v1039_v2 }
 0x4cd   :  { %v1036_v11 = vmul.f32 0.03125, %v1029_v9  ;;  %v1042_v26 = vmul.f32 %v1038_v8, %v1038_v8 }
 0x4ce   :  { %v1049_v12 = vsel %vm228_vm4, %v1043_v10, 0.0 }
 0x4cf   :  { %v1040_v13 = vsub.f32 %v1019_v58, %v1036_v11  ;;  %1050 = vadd.xlane.f32.xlu0 %v1049_v12  ;;  %v1046_v14 = vsel %vm228_vm4, %v1042_v26, 0.0 }
 0x4d0   :  { %1047 = vadd.xlane.f32.xlu1 %v1046_v14  ;;  %v1032_v27 = vpop.xlane.xlu0 %1031 }
 0x4d1   :  { %v1037_v15 = vmul.f32 0.03125, %v1032_v27  ;;  %v1044_v16 = vmul.f32 %v1040_v13, %v1040_v13 }
 0x4d3   :  { %v1041_v19 = vsub.f32 %v1020_v25, %v1037_v15  ;;  %v1052_v20 = vsel %vm228_vm4, %v1044_v16, 0.0 }
 0x4d4   :  { %1053 = vadd.xlane.f32.xlu1 %v1052_v20 }
 0x4d5   :  { %v1045_v21 = vmul.f32 %v1041_v19, %v1041_v19 }
 0x4d7   :  { %v1055_v22 = vsel %vm228_vm4, %v1045_v21, 0.0 }
 0x4d8   :  { %1056 = vadd.xlane.f32.xlu0 %v1055_v22 }
 0x55c   :  { %v1051_v3 = vpop.xlane.xlu0 %1050 }
 0x55d   :  { %v1059_v24 = vmul.f32 0.03125, %v1051_v3  ;;  %v1048_v28 = vpop.xlane.xlu1 %1047 }
 0x55e   :  { %v1058_v29 = vmul.f32 0.03125, %v1048_v28 }
 0x55f   :  { %v1063_v30 = vadd.f32 1e-05, %v1059_v24 }
 0x560   :  { %v1062_v31 = vadd.f32 1e-05, %v1058_v29 }
 0x561   :  { %1431 = vrsqrt.f32 %v1063_v30  ;;  %v1054_v32 = vpop.xlane.xlu1 %1053 }
 0x562   :  { %1433 = vrsqrt.f32 %v1062_v31  ;;  %v1060_v7 = vmul.f32 0.03125, %v1054_v32 }
 0x564   :  { %v1064_v33 = vadd.f32 1e-05, %v1060_v7 }
 0x565   :  { %v1057_v34 = vpop.xlane.xlu0 %1056 }
 0x566   :  { %1435 = vrsqrt.f32 %v1064_v33  ;;  %v1061_v35 = vmul.f32 0.03125, %v1057_v34 }
 0x568   :  { %v1065_v36 = vadd.f32 1e-05, %v1061_v35 }
 0x56a   :  { %1437 = vrsqrt.f32 %v1065_v36 }
 0x56b   :  { %v1432_v38 = vpop.eup %1431 }
 0x56c   :  { %v1434_v40 = vpop.eup %1433  ;;  %v1071_v41 = vmul.f32 %v1432_v38, %v1039_v2 }
 0x56d   :  { %v1070_v42 = vmul.f32 %v1434_v40, %v1038_v8 }
 0x56e   :  { %v1079_v44 = vmul.f32 %v1168_v39, %v1071_v41 }
 0x56f   :  { %v1078_v45 = vmul.f32 %v1168_v39, %v1070_v42 }
 0x570   :  { %v1436_v46 = vpop.eup %1435  ;;  %v1087_v51 = vadd.f32 %v1169_v43, %v1079_v44 }
 0x571   :  { %v1072_v47 = vmul.f32 %v1436_v46, %v1040_v13  ;;  %v1086_v50 = vadd.f32 %v1169_v43, %v1078_v45 }
 0x572   :  { %1091 = vst.msk [vmem:[#allocation5 + $0x8] sm:$0xff] %vm228_vm4, %v1087_v51 }
 0x573   :  { %v1080_v48 = vmul.f32 %v1168_v39, %v1072_v47  ;;  %1090 = vst.msk [vmem:[#allocation5] sm:$0xff] %vm228_vm4, %v1086_v50 }
 0x574   :  { %v1438_v49 = vpop.eup %1437 }
 0x575   :  { %v1073_v37 = vmul.f32 %v1438_v49, %v1041_v19  ;;  %v1088_v5 = vadd.f32 %v1169_v43, %v1080_v48 }
 0x577   :  { %v1081_v54 = vmul.f32 %v1168_v39, %v1073_v37  ;;  %1092 = vst.msk [vmem:[#allocation5 + $0x10] sm:$0xff] %vm228_vm4, %v1088_v5 }
 0x579   :  { %v1089_v4 = vadd.f32 %v1169_v43, %v1081_v54 }
 0x57b   :  { %1093 = vst.msk [vmem:[#allocation5 + $0x18] sm:$0xff] %vm228_vm4, %v1089_v4 }
 0x57c   :  { %1462 = shalt.err (!%p1459_p9)
}
 0x57d   :  { %s1463_s3 = scalar_lea.hbm %s1816_s8, 512 }
 0x57e   :  { %p1464_p10 = scmp.ne.s32.totalorder %s1816_s8, %s1463_s3  ;;  %p1467_p11 = scmp.lt.u32.totalorder %s1463_s3, %s1816_s8 }
 0x580   :  { %p1469_p12 = pnand %p1467_p11, %p1464_p10 }
 0x582   :  { %1472 = shalt.err (!%p1469_p12)
}
 0x583   :  { %s1484_s29 = smov 128   ;;  %s1485_s30 = smov 8  }
 0x584   :  { %1105 = dma.vmem_to_hbm [thread:$0]  %s1100_s22, 512, %s1816_s8, [#allocation3], %s1484_s29, %s1484_s29, %s1485_s30  }
 0x585   :  { %1475 = dma.done.wait [#allocation3], 512  }
 0x586   :  { %1476 = vsyncadd [#allocation3], 4294966784 }
 0x587   :  { %1109 = vsyncpa [#allocation3], 1 }
 0x588   :  { %1110 = vsyncpa [#allocation4], 1 }

</bundles_post_ra>
